<compile_context>
chip_gen: v7x
topology: tpu7x:2x2x1
jax: 0.10.0
libtpu: 0.0.40
codegen_flags: <defaults>
</compile_context>

<pallas_src>
import functools

import jax
import jax.numpy as jnp
from jax.experimental import pallas as pl
from jax.experimental.pallas import tpu as pltpu

_NEG_BIG = jnp.float32(-1e30)  # "minus infinity" for padded logit columns


def mlp_kernel(x_ref, w1_ref, b1_ref, w2_ref, b2_ref, o_ref):
    # x_ref : (TB, D_in)       input dtype (usually f32); cast to MXU dtype in-kernel
    # w1_ref: (D_in, H)        compute dtype (bf16 or f32)
    # b1_ref: (1, H)           f32
    # w2_ref: (H, D_out_pad)   compute dtype
    # b2_ref: (1, D_out_pad)   f32 (-1e30 in padded columns)
    # o_ref : (TB, D_out_pad)
    x = x_ref[...].astype(w1_ref.dtype)          # free VPU cast; single HBM read of x

    # fc1 + ReLU (MXU matmul, f32 accumulation; bias + relu in f32)
    h = jnp.dot(x, w1_ref[...], preferred_element_type=jnp.float32) + b1_ref[...]
    h = jnp.maximum(h, 0.0).astype(w2_ref.dtype)

    # fc2 (f32 accumulation)
    logits = (jnp.dot(h, w2_ref[...], preferred_element_type=jnp.float32)
              + b2_ref[...])

    # log_softmax in f32 over the lane-dense padded last axis.  Padded columns carry
    # -1e30: they never win the max and exp() underflows to 0, so real columns are
    # numerically identical to the unpadded computation.
    m = jnp.max(logits, axis=-1, keepdims=True)
    shifted = logits - m
    lse = jnp.log(jnp.sum(jnp.exp(shifted), axis=-1, keepdims=True))
    o_ref[...] = (shifted - lse).astype(o_ref.dtype)


def _round_up(v, m):
    return ((v + m - 1) // m) * m


def _vmem_cap_bytes():
    # Generation-aware cap: <= half of physical VMEM (64 MiB on v5e/v6e, 32 MiB on v7x).
    try:
        phys = int(pltpu.get_tpu_info().vmem_capacity_bytes)
    except Exception:  # pragma: no cover - defensive fallback
        phys = 64 << 20
    return max(16 << 20, phys // 2)


def pack_params(w1, b1, w2, b2, compute_dtype=jnp.bfloat16):
    """One-time weight packing (hoisted out of the per-forward jitted path).

    Returns ((w1_c, b1_2d, w2_p, b2_p), d_out) where W2 / b2 are zero / -1e30 padded
    to a multiple of 128 output columns and W1/W2 are cast to `compute_dtype`.
    """
    hidden = w1.shape[1]
    d_out = w2.shape[1]
    d_out_p = max(128, _round_up(d_out, 128))

    w1_c = jnp.asarray(w1, jnp.float32).astype(compute_dtype)
    b1_2d = jnp.asarray(b1, jnp.float32).reshape(1, hidden)
    w2_p = (jnp.zeros((hidden, d_out_p), jnp.float32)
            .at[:, :d_out].set(jnp.asarray(w2, jnp.float32))
            .astype(compute_dtype))
    b2_p = (jnp.full((1, d_out_p), _NEG_BIG, jnp.float32)
            .at[0, :d_out].set(jnp.asarray(b2, jnp.float32)))
    return (w1_c, b1_2d, w2_p, b2_p), d_out


@functools.partial(jax.jit, static_argnames=("d_out", "batch_tile", "out_dtype"))
def mlp_forward(x_nchw, w1_c, b1_2d, w2_p, b2_p, *, d_out, batch_tile=512,
                out_dtype=jnp.float32):
    """x_nchw: (B, C, H, W). Returns (B, d_out) log-probs in `out_dtype`."""
    B = x_nchw.shape[0]
    x = x_nchw.reshape(B, -1)                    # torch.flatten(x, 1); no dtype copy
    d_in = x.shape[1]
    hidden = w1_c.shape[1]
    d_out_p = w2_p.shape[1]

    # ---- dtype-aware batch tile: 16 rows for bf16 packing, 32 for 8-bit, 8 for f32.
    # Do NOT shrink the tile just to force a multi-step grid on small batches.
    w_isz = jnp.dtype(w1_c.dtype).itemsize
    g = {1: 32, 2: 16, 4: 8}.get(w_isz, 8)
    tile = max(g, (int(batch_tile) // g) * g)
    if B <= tile:
        tile = B                                  # single full-batch block (legal: full dim)
    grid = (pl.cdiv(B, tile),)                    # ragged tail handled by Pallas masking

    x_isz = jnp.dtype(x.dtype).itemsize
    o_isz = jnp.dtype(out_dtype).itemsize

    # ---- advisory cost estimate for the XLA scheduler ----
    cost = pl.CostEstimate(
        flops=2 * B * d_in * hidden + 2 * B * hidden * d_out_p,
        transcendentals=B * (d_out_p + 1),        # exp + log
        bytes_accessed=int(B * d_in * x_isz
                           + d_in * hidden * w_isz + hidden * d_out_p * w_isz
                           + (hidden + d_out_p) * 4
                           + B * d_out_p * o_isz),
    )

    # ---- VMEM budget: only raise the scoped limit when we'd exceed the small default;
    #      cap is generation-aware (<= half of physical VMEM). ----
    vmem_needed = (2 * tile * d_in * x_isz            # double-buffered x tiles
                   + 2 * d_in * hidden * w_isz        # W1 (default double-buffered)
                   + 2 * hidden * d_out_p * w_isz     # W2
                   + 2 * tile * d_out_p * o_isz       # double-buffered out tiles
                   + tile * hidden * 4                # h intermediate (f32)
                   + tile * d_out_p * 4               # logits intermediate (f32)
                   + (hidden + d_out_p) * 4 * 2       # biases
                   + (1 << 20))                       # slack
    cparams = dict(dimension_semantics=("parallel",))
    if vmem_needed > (14 << 20):
        cparams["vmem_limit_bytes"] = int(min(2 * vmem_needed, _vmem_cap_bytes()))

    out = pl.pallas_call(
        mlp_kernel,
        out_shape=jax.ShapeDtypeStruct((B, d_out_p), out_dtype),
        grid_spec=pltpu.PrefetchScalarGridSpec(
            num_scalar_prefetch=0,
            grid=grid,
            in_specs=[
                pl.BlockSpec((tile, d_in),      lambda i: (i, 0)),  # x tile (native dtype)
                pl.BlockSpec((d_in, hidden),    lambda i: (0, 0)),  # W1 (grid-invariant)
                pl.BlockSpec((1, hidden),       lambda i: (0, 0)),  # b1
                pl.BlockSpec((hidden, d_out_p), lambda i: (0, 0)),  # W2 (padded)
                pl.BlockSpec((1, d_out_p),      lambda i: (0, 0)),  # b2 (padded, -1e30)
            ],
            out_specs=pl.BlockSpec((tile, d_out_p), lambda i: (i, 0)),
        ),
        compiler_params=pltpu.CompilerParams(**cparams),
        cost_estimate=cost,
    )(x, w1_c, b1_2d, w2_p, b2_p)

    return out[:, :d_out]


def init_params(key, input_dim=784, hidden_dim=128, output_dim=10):
    # Deterministic init mimicking nn.Linear's uniform(-1/sqrt(fan_in), ...).
    k1, k2, k3, k4 = jax.random.split(key, 4)
    lim1 = 1.0 / jnp.sqrt(input_dim)
    lim2 = 1.0 / jnp.sqrt(hidden_dim)
    w1 = jax.random.uniform(k1, (input_dim, hidden_dim), jnp.float32, -lim1, lim1)
    b1 = jax.random.uniform(k2, (hidden_dim,), jnp.float32, -lim1, lim1)
    w2 = jax.random.uniform(k3, (hidden_dim, output_dim), jnp.float32, -lim2, lim2)
    b2 = jax.random.uniform(k4, (output_dim,), jnp.float32, -lim2, lim2)
    return w1, b1, w2, b2


if __name__ == "__main__":
    key = jax.random.PRNGKey(0)
    kx, kp = jax.random.split(key)

    # Small MNIST-like input: (B=16, C=1, H=28, W=28) -> flattened dim 784.
    B, C, H, W = 16, 1, 28, 28
    x = jax.random.normal(kx, (B, C, H, W), dtype=jnp.float32)

    w1, b1, w2, b2 = init_params(kp, input_dim=C * H * W,
                                 hidden_dim=128, output_dim=10)

    # Plain-JAX f32 reference (same math as the PyTorch module).
    xf = x.reshape(B, -1)
    ref = jax.nn.log_softmax(jnp.maximum(xf @ w1 + b1, 0.0) @ w2 + b2, axis=1)

    # 1) Exactness of the kernel structure (column padding / masking) in f32 compute.
    packed_f32, d_out = pack_params(w1, b1, w2, b2, compute_dtype=jnp.float32)
    out_f32 = jax.block_until_ready(mlp_forward(x, *packed_f32, d_out=d_out))
    assert out_f32.shape == (B, 10)
    assert jnp.allclose(out_f32, ref, atol=1e-5, rtol=1e-5), "f32 kernel mismatch"

    # 2) Default fast path: bf16 MXU streams, f32 accumulation / softmax.
    packed_bf16, d_out = pack_params(w1, b1, w2, b2)      # compute_dtype=bfloat16
    out_bf16 = jax.block_until_ready(mlp_forward(x, *packed_bf16, d_out=d_out))
    assert out_bf16.shape == (B, 10)
    assert jnp.allclose(out_bf16, ref, atol=5e-2, rtol=5e-2), "bf16 kernel mismatch"

    # 3) Ragged batch (B not a multiple of the tile): tail block is masked by Pallas.
    Br = 20
    xr = jax.random.normal(kx, (Br, C, H, W), dtype=jnp.float32)
    ref_r = jax.nn.log_softmax(
        jnp.maximum(xr.reshape(Br, -1) @ w1 + b1, 0.0) @ w2 + b2, axis=1)
    out_r = jax.block_until_ready(
        mlp_forward(xr, *packed_bf16, d_out=d_out, batch_tile=16))
    assert out_r.shape == (Br, 10)
    assert jnp.allclose(out_r, ref_r, atol=5e-2, rtol=5e-2), "ragged-batch mismatch"

    print("KERNEL_OK")
</pallas_src>

<mosaic_0001>
module attributes {stable_mosaic.version = 11 : i64} {
  func.func @mlp_kernel(%arg0: i32, %arg1: memref<16x784xf32, #tpu.memory_space<vmem>>, %arg2: memref<784x128xf32, #tpu.memory_space<vmem>>, %arg3: memref<1x128xf32, #tpu.memory_space<vmem>>, %arg4: memref<128x128xf32, #tpu.memory_space<vmem>>, %arg5: memref<1x128xf32, #tpu.memory_space<vmem>>, %arg6: memref<16x128xf32, #tpu.memory_space<vmem>>) attributes {dimension_semantics = [#tpu.dimension_semantics<parallel>], iteration_bounds = array<i64: 1>, scalar_prefetch = 0 : i64, scratch_operands = 0 : i64, tpu.core_type = #tpu.core_type<tc>, window_params = [{transform_indices = @transform_0, window_bounds = array<i64: 16, 784>}, {pipeline_mode = #tpu.pipeline_mode<synchronous>, transform_indices = @transform_1, window_bounds = array<i64: 784, 128>}, {pipeline_mode = #tpu.pipeline_mode<synchronous>, transform_indices = @transform_2, window_bounds = array<i64: 1, 128>}, {pipeline_mode = #tpu.pipeline_mode<synchronous>, transform_indices = @transform_3, window_bounds = array<i64: 128, 128>}, {pipeline_mode = #tpu.pipeline_mode<synchronous>, transform_indices = @transform_4, window_bounds = array<i64: 1, 128>}, {transform_indices = @transform_5, window_bounds = array<i64: 16, 128>}]} {
    %c0 = arith.constant 0 : index
    %c0_0 = arith.constant 0 : index
    %0 = vector.load %arg1[%c0, %c0_0] : memref<16x784xf32, #tpu.memory_space<vmem>>, vector<16x784xf32>
    %c0_1 = arith.constant 0 : index
    %c0_2 = arith.constant 0 : index
    %1 = vector.load %arg2[%c0_1, %c0_2] : memref<784x128xf32, #tpu.memory_space<vmem>>, vector<784x128xf32>
    %cst = arith.constant dense<0.000000e+00> : vector<16x128xf32>
    %2 = tpu.matmul %0, %1, %cst {dimension_numbers = #tpu.dot_dimension_numbers<[1], [0], [0], [1], [0, 0, 1, 1], [], []>} : vector<16x784xf32>, vector<784x128xf32>, vector<16x128xf32> -> vector<16x128xf32>
    %c0_3 = arith.constant 0 : index
    %c0_4 = arith.constant 0 : index
    %3 = vector.load %arg3[%c0_3, %c0_4] : memref<1x128xf32, #tpu.memory_space<vmem>>, vector<1x128xf32>
    %4 = vector.broadcast %3 : vector<1x128xf32> to vector<16x128xf32>
    %5 = arith.addf %2, %4 : vector<16x128xf32>
    %cst_5 = arith.constant 0.000000e+00 : f32
    %6 = vector.broadcast %cst_5 : f32 to vector<16x128xf32>
    %7 = arith.maximumf %5, %6 : vector<16x128xf32>
    %c0_6 = arith.constant 0 : index
    %c0_7 = arith.constant 0 : index
    %8 = vector.load %arg4[%c0_6, %c0_7] : memref<128x128xf32, #tpu.memory_space<vmem>>, vector<128x128xf32>
    %cst_8 = arith.constant dense<0.000000e+00> : vector<16x128xf32>
    %9 = tpu.matmul %7, %8, %cst_8 {dimension_numbers = #tpu.dot_dimension_numbers<[1], [0], [0], [1], [0, 0, 1, 1], [], []>} : vector<16x128xf32>, vector<128x128xf32>, vector<16x128xf32> -> vector<16x128xf32>
    %c0_9 = arith.constant 0 : index
    %c0_10 = arith.constant 0 : index
    %10 = vector.load %arg5[%c0_9, %c0_10] : memref<1x128xf32, #tpu.memory_space<vmem>>, vector<1x128xf32>
    %11 = vector.broadcast %10 : vector<1x128xf32> to vector<16x128xf32>
    %12 = arith.addf %9, %11 : vector<16x128xf32>
    %cst_11 = arith.constant dense<0xFF800000> : vector<16xf32>
    %13 = vector.multi_reduction <maximumf>, %12, %cst_11 [1] : vector<16x128xf32> to vector<16xf32>
    %14 = vector.shape_cast %13 : vector<16xf32> to vector<16x1xf32>
    %15 = vector.broadcast %14 : vector<16x1xf32> to vector<16x128xf32>
    %16 = arith.subf %12, %15 : vector<16x128xf32>
    %17 = math.exp %16 : vector<16x128xf32>
    %cst_12 = arith.constant dense<0.000000e+00> : vector<16xf32>
    %18 = vector.multi_reduction <add>, %17, %cst_12 [1] : vector<16x128xf32> to vector<16xf32>
    %19 = vector.shape_cast %18 : vector<16xf32> to vector<16x1xf32>
    %20 = math.log %19 : vector<16x1xf32>
    %21 = vector.broadcast %20 : vector<16x1xf32> to vector<16x128xf32>
    %22 = arith.subf %16, %21 : vector<16x128xf32>
    %c0_13 = arith.constant 0 : index
    %c0_14 = arith.constant 0 : index
    %23 = vector.load %arg6[%c0_13, %c0_14] : memref<16x128xf32, #tpu.memory_space<vmem>>, vector<16x128xf32>
    tpu.vector_store %arg6[%c0_13, %c0_14], %22 {strides = array<i32>} : memref<16x128xf32, #tpu.memory_space<vmem>>, vector<16x128xf32>,
    return
  }
  func.func @transform_0(%arg0: i32) -> (i32, i32) {
    %c0_i32 = arith.constant 0 : i32
    %c0_i32_0 = arith.constant 0 : i32
    return %arg0, %c0_i32 : i32, i32
  }
  func.func @transform_1(%arg0: i32) -> (i32, i32) {
    %c0_i32 = arith.constant 0 : i32
    %c0_i32_0 = arith.constant 0 : i32
    %c0_i32_1 = arith.constant 0 : i32
    return %c0_i32, %c0_i32_0 : i32, i32
  }
  func.func @transform_2(%arg0: i32) -> (i32, i32) {
    %c0_i32 = arith.constant 0 : i32
    %c0_i32_0 = arith.constant 0 : i32
    %c0_i32_1 = arith.constant 0 : i32
    return %c0_i32, %c0_i32_0 : i32, i32
  }
  func.func @transform_3(%arg0: i32) -> (i32, i32) {
    %c0_i32 = arith.constant 0 : i32
    %c0_i32_0 = arith.constant 0 : i32
    %c0_i32_1 = arith.constant 0 : i32
    return %c0_i32, %c0_i32_0 : i32, i32
  }
  func.func @transform_4(%arg0: i32) -> (i32, i32) {
    %c0_i32 = arith.constant 0 : i32
    %c0_i32_0 = arith.constant 0 : i32
    %c0_i32_1 = arith.constant 0 : i32
    return %c0_i32, %c0_i32_0 : i32, i32
  }
  func.func @transform_5(%arg0: i32) -> (i32, i32) {
    %c0_i32 = arith.constant 0 : i32
    %c0_i32_0 = arith.constant 0 : i32
    return %arg0, %c0_i32 : i32, i32
  }
}

</mosaic_0001>

<bundles_post_ra>
// kernel: mlp_forward.1
= control target key start
LH: loop header
LB: loop body
LE: loop exit
PB: predicated region body
PF: predicated region fallthrough
CT: control target
= control target key end

     0   :  { %s1369_s0 = inlined_call_operand.vmem [shape: f32[16,784], index: 0, kind: input, shape index: {}]   ;;  %s1370_s1 = inlined_call_operand.vmem [shape: f32[784,128], index: 1, kind: input, shape index: {}]   ;;  %s1371_s2 = inlined_call_operand.vmem [shape: f32[1,128], index: 2, kind: input, shape index: {}]   ;;  %s1372_s3 = inlined_call_operand.vmem [shape: f32[128,128], index: 3, kind: input, shape index: {}]   ;;  %s1373_s4 = inlined_call_operand.vmem [shape: f32[1,128], index: 4, kind: input, shape index: {}]   ;;  %s1374_s5 = inlined_call_operand.hbm [shape: f32[16,128], index: 5, kind: output, shape index: {}]  }
   0x1   :  { %v51_v0 = vld [vmem:[%s1370_s1 + $0x80] sm:$0xff]  ;;  %v52_v1 = vld [vmem:[%s1370_s1 + $0x88] sm:$0xff]  ;;  %v53_v11 = vld [vmem:[%s1370_s1 + $0x90] sm:$0xff] }
   0x2   :  { %v35_v2 = vld [vmem:[%s1370_s1] sm:$0xff]  ;;  %v767_v3 = vpack.c.bf16 %v52_v1, %v51_v0  ;;  %v36_v4 = vld [vmem:[%s1370_s1 + $0x8] sm:$0xff]  ;;  %v54_v13 = vld [vmem:[%s1370_s1 + $0x98] sm:$0xff] }
   0x3   :  { %v83_v5 = vld [vmem:[%s1370_s1 + $0x180] sm:$0xff]  ;;  %v84_v6 = vld [vmem:[%s1370_s1 + $0x188] sm:$0xff]  ;;  %v769_v7 = vpack.c.bf16 %v36_v4, %v35_v2  ;;  %v37_v14 = vld [vmem:[%s1370_s1 + $0x10] sm:$0xff]  ;;  %v771_v16 = vpack.c.bf16 %v54_v13, %v53_v11 }
   0x4   :  { %v799_v8 = vpack.c.bf16 %v84_v6, %v83_v5  ;;  %v67_v9 = vld [vmem:[%s1370_s1 + $0x100] sm:$0xff]  ;;  %v68_v10 = vld [vmem:[%s1370_s1 + $0x108] sm:$0xff]  ;;  %768 = vmatprep.subr.bf16.mxu0 %v767_v3  ;;  %v38_v15 = vld [vmem:[%s1370_s1 + $0x18] sm:$0xff] }
   0x5   :  { %v801_v12 = vpack.c.bf16 %v68_v10, %v67_v9  ;;  %770 = vmatpush3.bf16.msra.mxu0 %v769_v7  ;;  %v773_v17 = vpack.c.bf16 %v38_v15, %v37_v14  ;;  %v85_v18 = vld [vmem:[%s1370_s1 + $0x190] sm:$0xff]  ;;  %v86_v19 = vld [vmem:[%s1370_s1 + $0x198] sm:$0xff]  ;;  %v55_v23 = vld [vmem:[%s1370_s1 + $0xa0] sm:$0xff] }
   0x6   :  { %800 = vmatprep.subr.bf16.mxu1 %v799_v8  ;;  %v69_v20 = vld [vmem:[%s1370_s1 + $0x110] sm:$0xff]  ;;  %v803_v21 = vpack.c.bf16 %v86_v19, %v85_v18  ;;  %v70_v22 = vld [vmem:[%s1370_s1 + $0x118] sm:$0xff]  ;;  %v56_v24 = vld [vmem:[%s1370_s1 + $0xa8] sm:$0xff]  ;;  %772 = vmatprep.subr.bf16.mxu0 %v771_v16 }
   0x7   :  { %802 = vmatpush3.bf16.msra.mxu1 %v801_v12  ;;  %v805_v25 = vpack.c.bf16 %v70_v22, %v69_v20  ;;  %v775_v26 = vpack.c.bf16 %v56_v24, %v55_v23  ;;  %v39_v27 = vld [vmem:[%s1370_s1 + $0x20] sm:$0xff]  ;;  %v40_v28 = vld [vmem:[%s1370_s1 + $0x28] sm:$0xff]  ;;  %v57_v35 = vld [vmem:[%s1370_s1 + $0xb0] sm:$0xff] }
   0x8   :  { %v87_v29 = vld [vmem:[%s1370_s1 + $0x1a0] sm:$0xff]  ;;  %804 = vmatprep.subr.bf16.mxu1 %v803_v21  ;;  %v88_v30 = vld [vmem:[%s1370_s1 + $0x1a8] sm:$0xff]  ;;  %v777_v33 = vpack.c.bf16 %v40_v28, %v39_v27  ;;  %v58_v36 = vld [vmem:[%s1370_s1 + $0xb8] sm:$0xff] }
   0x9   :  { %v71_v31 = vld [vmem:[%s1370_s1 + $0x120] sm:$0xff]  ;;  %v72_v32 = vld [vmem:[%s1370_s1 + $0x128] sm:$0xff]  ;;  %774 = vmatpush3.bf16.msra.mxu0 %v773_v17  ;;  %v807_v34 = vpack.c.bf16 %v88_v30, %v87_v29  ;;  %v41_v37 = vld [vmem:[%s1370_s1 + $0x30] sm:$0xff]  ;;  %v779_v39 = vpack.c.bf16 %v58_v36, %v57_v35 }
   0xa   :  { %776 = vmatprep.subr.bf16.mxu0 %v775_v26  ;;  %v809_v38 = vpack.c.bf16 %v72_v32, %v71_v31  ;;  %v42_v40 = vld [vmem:[%s1370_s1 + $0x38] sm:$0xff]  ;;  %v89_v41 = vld [vmem:[%s1370_s1 + $0x1b0] sm:$0xff]  ;;  %v59_v46 = vld [vmem:[%s1370_s1 + $0xc0] sm:$0xff] }
   0xb   :  { %806 = vmatpush3.bf16.msra.mxu1 %v805_v25  ;;  %v90_v42 = vld [vmem:[%s1370_s1 + $0x1b8] sm:$0xff]  ;;  %v73_v44 = vld [vmem:[%s1370_s1 + $0x130] sm:$0xff]  ;;  %v60_v47 = vld [vmem:[%s1370_s1 + $0xc8] sm:$0xff]  ;;  %v781_v48 = vpack.c.bf16 %v42_v40, %v41_v37 }
   0xc   :  { %808 = vmatprep.subr.bf16.mxu1 %v807_v34  ;;  %v811_v43 = vpack.c.bf16 %v90_v42, %v89_v41  ;;  %v74_v45 = vld [vmem:[%s1370_s1 + $0x138] sm:$0xff]  ;;  %v91_v49 = vld [vmem:[%s1370_s1 + $0x1c0] sm:$0xff]  ;;  %v92_v50 = vld [vmem:[%s1370_s1 + $0x1c8] sm:$0xff]  ;;  %v783_v52 = vpack.c.bf16 %v60_v47, %v59_v46 }
   0xd   :  { %778 = vmatpush3.bf16.msra.mxu0 %v777_v33  ;;  %v813_v51 = vpack.c.bf16 %v74_v45, %v73_v44  ;;  %v43_v53 = vld [vmem:[%s1370_s1 + $0x40] sm:$0xff]  ;;  %v44_v54 = vld [vmem:[%s1370_s1 + $0x48] sm:$0xff]  ;;  %v815_v56 = vpack.c.bf16 %v92_v50, %v91_v49  ;;  %v61_v58 = vld [vmem:[%s1370_s1 + $0xd0] sm:$0xff] }
   0xe   :  { %780 = vmatprep.subr.bf16.mxu0 %v779_v39  ;;  %v75_v55 = vld [vmem:[%s1370_s1 + $0x140] sm:$0xff]  ;;  %v76_v57 = vld [vmem:[%s1370_s1 + $0x148] sm:$0xff]  ;;  %v62_v59 = vld [vmem:[%s1370_s1 + $0xd8] sm:$0xff]  ;;  %v785_v62 = vpack.c.bf16 %v44_v54, %v43_v53 }
   0xf   :  { %810 = vmatpush3.bf16.msra.mxu1 %v809_v38  ;;  %v93_v60 = vld [vmem:[%s1370_s1 + $0x1d0] sm:$0xff]  ;;  %v94_v61 = vld [vmem:[%s1370_s1 + $0x1d8] sm:$0xff]  ;;  %v817_v63 = vpack.c.bf16 %v76_v57, %v75_v55  ;;  %v787_v0 = vpack.c.bf16 %v62_v59, %v61_v58  ;;  %v63_v6 = vld [vmem:[%s1370_s1 + $0xe0] sm:$0xff] }
  0x10   :  { %812 = vmatprep.subr.bf16.mxu1 %v811_v43  ;;  %v45_v1 = vld [vmem:[%s1370_s1 + $0x50] sm:$0xff]  ;;  %v46_v2 = vld [vmem:[%s1370_s1 + $0x58] sm:$0xff]  ;;  %v819_v4 = vpack.c.bf16 %v94_v61, %v93_v60  ;;  %v64_v7 = vld [vmem:[%s1370_s1 + $0xe8] sm:$0xff] }
  0x11   :  { %782 = vmatpush3.bf16.msra.mxu0 %v781_v48  ;;  %v77_v3 = vld [vmem:[%s1370_s1 + $0x150] sm:$0xff]  ;;  %v78_v5 = vld [vmem:[%s1370_s1 + $0x158] sm:$0xff]  ;;  %v95_v8 = vld [vmem:[%s1370_s1 + $0x1e0] sm:$0xff]  ;;  %v789_v10 = vpack.c.bf16 %v46_v2, %v45_v1  ;;  %v791_v14 = vpack.c.bf16 %v64_v7, %v63_v6 }
  0x12   :  { %784 = vmatprep.subr.bf16.mxu0 %v783_v52  ;;  %v96_v9 = vld [vmem:[%s1370_s1 + $0x1e8] sm:$0xff]  ;;  %v47_v11 = vld [vmem:[%s1370_s1 + $0x60] sm:$0xff]  ;;  %v821_v13 = vpack.c.bf16 %v78_v5, %v77_v3  ;;  %v65_v19 = vld [vmem:[%s1370_s1 + $0xf0] sm:$0xff] }
  0x13   :  { %814 = vmatpush3.bf16.msra.mxu1 %v813_v51  ;;  %v22_v12 = vld [vmem:[%s1369_s0 + $0x8] sm:$0xff]  ;;  %v79_v16 = vld [vmem:[%s1370_s1 + $0x160] sm:$0xff]  ;;  %v823_v18 = vpack.c.bf16 %v96_v9, %v95_v8  ;;  %v66_v20 = vld [vmem:[%s1370_s1 + $0xf8] sm:$0xff] }
  0x14   :  { %816 = vmatprep.subr.bf16.mxu1 %v815_v56  ;;  %v48_v15 = vld [vmem:[%s1370_s1 + $0x68] sm:$0xff]  ;;  %211 = vmatprep.mubr.f32.mxu0 %v22_v12  ;;  %v24_v21 = vld [vmem:[%s1369_s0 + $0x18] sm:$0xff]  ;;  %v97_v22 = vld [vmem:[%s1370_s1 + $0x1f0] sm:$0xff]  ;;  %v795_v26 = vpack.c.bf16 %v66_v20, %v65_v19 }
  0x15   :  { %786 = vmatpush3.bf16.msra.mxu0 %v785_v62  ;;  %v80_v17 = vld [vmem:[%s1370_s1 + $0x168] sm:$0xff]  ;;  %v98_v23 = vld [vmem:[%s1370_s1 + $0x1f8] sm:$0xff]  ;;  %286 = vmatprep.mubr.f32.mxu1 %v24_v21  ;;  %v793_v24 = vpack.c.bf16 %v48_v15, %v47_v11  ;;  %v49_v27 = vld [vmem:[%s1370_s1 + $0x70] sm:$0xff] }
  0x16   :  { %788 = vmatprep.subr.bf16.mxu0 %v787_v0  ;;  %v825_v25 = vpack.c.bf16 %v80_v17, %v79_v16  ;;  %v50_v28 = vld [vmem:[%s1370_s1 + $0x78] sm:$0xff]  ;;  %v81_v29 = vld [vmem:[%s1370_s1 + $0x170] sm:$0xff]  ;;  %v827_v30 = vpack.c.bf16 %v98_v23, %v97_v22  ;;  %v115_v32 = vld [vmem:[%s1370_s1 + $0x280] sm:$0xff] }
  0x17   :  { %818 = vmatpush3.bf16.msra.mxu1 %v817_v63  ;;  %v82_v31 = vld [vmem:[%s1370_s1 + $0x178] sm:$0xff]  ;;  %v116_v33 = vld [vmem:[%s1370_s1 + $0x288] sm:$0xff]  ;;  %v797_v34 = vpack.c.bf16 %v50_v28, %v49_v27  ;;  %v99_v37 = vld [vmem:[%s1370_s1 + $0x200] sm:$0xff] }
  0x18   :  { %820 = vmatprep.subr.bf16.mxu1 %v819_v4  ;;  %v829_v35 = vpack.c.bf16 %v82_v31, %v81_v29  ;;  %v831_v36 = vpack.c.bf16 %v116_v33, %v115_v32  ;;  %v100_v38 = vld [vmem:[%s1370_s1 + $0x208] sm:$0xff]  ;;  %v117_v39 = vld [vmem:[%s1370_s1 + $0x290] sm:$0xff]  ;;  %v118_v40 = vld [vmem:[%s1370_s1 + $0x298] sm:$0xff] }
  0x19   :  { %790 = vmatpush3.bf16.msra.mxu0 %v789_v10  ;;  %v21_v41 = vld [vmem:[%s1369_s0] sm:$0xff]  ;;  %v833_v42 = vpack.c.bf16 %v100_v38, %v99_v37  ;;  %v23_v43 = vld [vmem:[%s1369_s0 + $0x10] sm:$0xff]  ;;  %v835_v44 = vpack.c.bf16 %v118_v40, %v117_v39  ;;  %v102_v46 = vld [vmem:[%s1370_s1 + $0x218] sm:$0xff] }
  0x1a   :  { %792 = vmatprep.subr.bf16.mxu0 %v791_v14  ;;  %v101_v45 = vld [vmem:[%s1370_s1 + $0x210] sm:$0xff]  ;;  %v119_v47 = vld [vmem:[%s1370_s1 + $0x2a0] sm:$0xff]  ;;  %v120_v48 = vld [vmem:[%s1370_s1 + $0x2a8] sm:$0xff] }
  0x1b   :  { %822 = vmatpush3.bf16.msra.mxu1 %v821_v13  ;;  %v29_v49 = vld [vmem:[%s1369_s0 + $0x40] sm:$0xff]  ;;  %v31_v51 = vld [vmem:[%s1369_s0 + $0x50] sm:$0xff]  ;;  %v132_v52 = vld [vmem:[%s1370_s1 + $0x308] sm:$0xff]  ;;  %v837_v53 = vpack.c.bf16 %v102_v46, %v101_v45  ;;  %v839_v57 = vpack.c.bf16 %v120_v48, %v119_v47 }
  0x1c   :  { %824 = vmatprep.subr.bf16.mxu1 %v823_v18  ;;  %v131_v50 = vld [vmem:[%s1370_s1 + $0x300] sm:$0xff]  ;;  %v28_v55 = vld [vmem:[%s1369_s0 + $0x38] sm:$0xff]  ;;  %v104_v58 = vld [vmem:[%s1370_s1 + $0x228] sm:$0xff] }
  0x1d   :  { %794 = vmatpush3.bf16.msra.mxu0 %v793_v24  ;;  %v103_v54 = vld [vmem:[%s1370_s1 + $0x220] sm:$0xff]  ;;  %v863_v56 = vpack.c.bf16 %v132_v52, %v131_v50  ;;  %v30_v59 = vld [vmem:[%s1369_s0 + $0x48] sm:$0xff] }
  0x1e   :  { %796 = vmatprep.subr.bf16.mxu0 %v795_v26 }
  0x1f   :  { %826 = vmatpush3.bf16.msra.mxu1 %v825_v25 }
  0x20   :  { %828 = vmatprep.subr.bf16.mxu1 %v827_v30 }
  0x21   :  { %798 = vmatpush3.bf16.msra.mxu0 %v797_v34 }
  0x22   :  { %832 = vmatprep.subr.bf16.mxu0 %v831_v36 }
  0x23   :  { %830 = vmatpush3.bf16.msra.mxu1 %v829_v35 }
  0x24   :  { %212 = vmatmul.mubr.f32.vlgmr.msra.gmra.mrb[0].mxu0 %v21_v41 }
  0x25   :  { %834 = vmatpush3.bf16.msra.mxu0 %v833_v42  ;;  %216 = vmatprep.mubr.f32.mxu0 %v29_v49 }
  0x26   :  { %287 = vmatmul.mubr.f32.vlgmr.msra.gmra.mrb[0].mxu1 %v23_v43  ;;  %836 = vmatprep.subr.bf16.mxu0 %v835_v44 }
  0x27   :  { %10 = vsyncpa [#allocation3], 0  ;;  %v121_v60 = vld [vmem:[%s1370_s1 + $0x2b0] sm:$0xff]  ;;  %v122_v61 = vld [vmem:[%s1370_s1 + $0x2b8] sm:$0xff]  ;;  %291 = vmatprep.mubr.f32.mxu1 %v31_v51  ;;  %864 = vmatprep.subr.bf16.mxu1 %v863_v56  ;;  %vm140_vm0 = vcmask 130048   ;;  %v841_v0 = vpack.c.bf16 %v104_v58, %v103_v54 }
  0x28   :  { %v26_v62 = vld [vmem:[%s1369_s0 + $0x28] sm:$0xff]  ;;  %217 = vmatmul.mubr.f32.gmra.mrb[2].mxu0 %v28_v55  ;;  %866 = vmatpush3.bf16.msra.mxu1 %v863_v56  ;;  %v27_v63 = vld [vmem:[%s1369_s0 + $0x30] sm:$0xff]  ;;  %v843_v1 = vpack.c.bf16 %v122_v61, %v121_v60  ;;  %v106_v3 = vld [vmem:[%s1370_s1 + $0x238] sm:$0xff] }
  0x29   :  { %838 = vmatpush3.bf16.msra.mxu0 %v837_v53  ;;  %v105_v2 = vld [vmem:[%s1370_s1 + $0x230] sm:$0xff]  ;;  %361 = vmatprep.mubr.f32.mxu0 %v26_v62  ;;  %v34_v4 = vld [vmem:[%s1369_s0 + $0x68] sm:$0xff]  ;;  %v123_v5 = vld [vmem:[%s1370_s1 + $0x2c0] sm:$0xff] }
  0x2a   :  { %292 = vmatmul.mubr.f32.gmra.mrb[2].mxu1 %v30_v59  ;;  %840 = vmatprep.subr.bf16.mxu0 %v839_v57  ;;  %v124_v6 = vld [vmem:[%s1370_s1 + $0x2c8] sm:$0xff]  ;;  %v845_v7 = vpack.c.bf16 %v106_v3, %v105_v2  ;;  %v107_v9 = vld [vmem:[%s1370_s1 + $0x240] sm:$0xff]  ;;  %v125_v11 = vld [vmem:[%s1370_s1 + $0x2d0] sm:$0xff] }
  0x2b   :  { %729 = vmatprep.mubr.msk.f32.mxu1 %vm140_vm0, %v27_v63  ;;  %v847_v8 = vpack.c.bf16 %v124_v6, %v123_v5  ;;  %v108_v10 = vld [vmem:[%s1370_s1 + $0x248] sm:$0xff]  ;;  %v126_v12 = vld [vmem:[%s1370_s1 + $0x2d8] sm:$0xff]  ;;  %v109_v15 = vld [vmem:[%s1370_s1 + $0x250] sm:$0xff] }
  0x2c   :  { %v849_v13 = vpack.c.bf16 %v108_v10, %v107_v9  ;;  %v851_v14 = vpack.c.bf16 %v126_v12, %v125_v11  ;;  %v110_v16 = vld [vmem:[%s1370_s1 + $0x258] sm:$0xff]  ;;  %v127_v17 = vld [vmem:[%s1370_s1 + $0x2e0] sm:$0xff]  ;;  %v128_v18 = vld [vmem:[%s1370_s1 + $0x2e8] sm:$0xff] }
  0x2d   :  { %842 = vmatpush3.bf16.msra.mxu0 %v841_v0  ;;  %v853_v19 = vpack.c.bf16 %v110_v16, %v109_v15  ;;  %v855_v20 = vpack.c.bf16 %v128_v18, %v127_v17  ;;  %v111_v21 = vld [vmem:[%s1370_s1 + $0x260] sm:$0xff]  ;;  %v112_v22 = vld [vmem:[%s1370_s1 + $0x268] sm:$0xff]  ;;  %v129_v23 = vld [vmem:[%s1370_s1 + $0x2f0] sm:$0xff] }
  0x2e   :  { %730 = vmatmul.mubr.msk.f32.vlgmr.msra.gmra.mrb[4].mxu1 %vm140_vm0, %v34_v4  ;;  %844 = vmatprep.subr.bf16.mxu0 %v843_v1  ;;  %v130_v24 = vld [vmem:[%s1370_s1 + $0x2f8] sm:$0xff]  ;;  %v857_v25 = vpack.c.bf16 %v112_v22, %v111_v21  ;;  %v113_v27 = vld [vmem:[%s1370_s1 + $0x270] sm:$0xff]  ;;  %v25_v30 = vld [vmem:[%s1369_s0 + $0x20] sm:$0xff] }
  0x2f   :  { %v859_v26 = vpack.c.bf16 %v130_v24, %v129_v23  ;;  %v114_v28 = vld [vmem:[%s1370_s1 + $0x278] sm:$0xff]  ;;  %v33_v31 = vld [vmem:[%s1369_s0 + $0x60] sm:$0xff]  ;;  %v450_v34 = vld [vmem:[%s1372_s3 + $0x8] sm:$0xff] }
  0x30   :  { %v861_v29 = vpack.c.bf16 %v114_v28, %v113_v27  ;;  %v32_v32 = vld [vmem:[%s1369_s0 + $0x58] sm:$0xff]  ;;  %v449_v33 = vld [vmem:[%s1372_s3] sm:$0xff]  ;;  %v451_v35 = vld [vmem:[%s1372_s3 + $0x10] sm:$0xff] }
  0x31   :  { %846 = vmatpush3.bf16.msra.mxu0 %v845_v7  ;;  %v867_v36 = vpack.c.bf16 %v450_v34, %v449_v33  ;;  %v452_v37 = vld [vmem:[%s1372_s3 + $0x18] sm:$0xff]  ;;  %v453_v39 = vld [vmem:[%s1372_s3 + $0x20] sm:$0xff]  ;;  %v454_v40 = vld [vmem:[%s1372_s3 + $0x28] sm:$0xff] }
  0x32   :  { %848 = vmatprep.subr.bf16.mxu0 %v847_v8  ;;  %v871_v38 = vpack.c.bf16 %v452_v37, %v451_v35  ;;  %v875_v41 = vpack.c.bf16 %v454_v40, %v453_v39  ;;  %v455_v42 = vld [vmem:[%s1372_s3 + $0x30] sm:$0xff]  ;;  %v456_v43 = vld [vmem:[%s1372_s3 + $0x38] sm:$0xff]  ;;  %v457_v45 = vld [vmem:[%s1372_s3 + $0x40] sm:$0xff] }
  0x33   :  { %868 = vmatprep.subr.bf16.mxu1 %v867_v36  ;;  %v879_v44 = vpack.c.bf16 %v456_v43, %v455_v42  ;;  %v458_v46 = vld [vmem:[%s1372_s3 + $0x48] sm:$0xff]  ;;  %v459_v48 = vld [vmem:[%s1372_s3 + $0x50] sm:$0xff]  ;;  %v460_v49 = vld [vmem:[%s1372_s3 + $0x58] sm:$0xff] }
  0x34   :  { %870 = vmatpush3.bf16.msra.mxu1 %v867_v36  ;;  %v883_v47 = vpack.c.bf16 %v458_v46, %v457_v45  ;;  %v887_v50 = vpack.c.bf16 %v460_v49, %v459_v48  ;;  %v461_v51 = vld [vmem:[%s1372_s3 + $0x60] sm:$0xff]  ;;  %v462_v52 = vld [vmem:[%s1372_s3 + $0x68] sm:$0xff]  ;;  %v463_v54 = vld [vmem:[%s1372_s3 + $0x70] sm:$0xff] }
  0x35   :  { %850 = vmatpush3.bf16.msra.mxu0 %v849_v13  ;;  %872 = vmatprep.subr.bf16.mxu1 %v871_v38  ;;  %v891_v53 = vpack.c.bf16 %v462_v52, %v461_v51  ;;  %v464_v55 = vld [vmem:[%s1372_s3 + $0x78] sm:$0xff]  ;;  %v585_v58 = vld [vmem:[%s1371_s2] ss:$0 sm:$0xff] }
  0x36   :  { %852 = vmatprep.subr.bf16.mxu0 %v851_v14  ;;  %v895_v56 = vpack.c.bf16 %v464_v55, %v463_v54  ;;  %v588_v24 = vld [vmem:[%s1373_s4] ss:$0 sm:$0xff]  ;;  %s934_s4 = smov [#allocation2]  }
  0x37   :  { %s574_s23 = sshll.u32 %s934_s4, 4  ;;  %s575_s23 = int_to_ptr.vmem [resolvable:$true] %s574_s23 }
  0x38   :  { %874 = vmatpush3.bf16.msra.mxu1 %v871_v38  ;;  %s910_s0 = scalar_lea.vmem %s575_s23, 256  ;;  %p915_p1 = scmp.lt.s32.totalorder %s575_s23, %s575_s23 }
  0x39   :  { %854 = vmatpush3.bf16.msra.mxu0 %v853_v19  ;;  %876 = vmatprep.subr.bf16.mxu1 %v875_v41  ;;  %p911_p0 = scmp.ne.s32.totalorder %s575_s23, %s910_s0  ;;  %p916_p2 = scmp.lt.s32.totalorder %s910_s0, %s910_s0 }
  0x3a   :  { %856 = vmatprep.subr.bf16.mxu0 %v855_v20 }
  0x3b   :  { %p917_p3 = por %p916_p2, %p915_p1 }
  0x3c   :  { %878 = vmatpush3.bf16.msra.mxu1 %v875_v41 }
  0x3d   :  { %858 = vmatpush3.bf16.msra.mxu0 %v857_v25  ;;  %880 = vmatprep.subr.bf16.mxu1 %v879_v44  ;;  %p918_p4 = pnand %p917_p3, %p911_p0 }
  0x3e   :  { %860 = vmatprep.subr.bf16.mxu0 %v859_v26 }
  0x40   :  { %882 = vmatpush3.bf16.msra.mxu1 %v879_v44 }
  0x41   :  { %862 = vmatpush3.bf16.msra.mxu0 %v861_v29  ;;  %884 = vmatprep.subr.bf16.mxu1 %v883_v47 }
  0x44   :  { %362 = vmatmul.mubr.f32.vlgmr.msra.gmra.mrb[4].mxu0 %v25_v30  ;;  %886 = vmatpush3.bf16.msra.mxu1 %v883_v47 }
  0x45   :  { %366 = vmatprep.mubr.f32.mxu0 %v33_v31  ;;  %888 = vmatprep.subr.bf16.mxu1 %v887_v50 }
  0x48   :  { %367 = vmatmul.mubr.f32.gmra.mrb[6].mxu0 %v32_v32  ;;  %890 = vmatpush3.bf16.msra.mxu1 %v887_v50 }
  0x49   :  { %892 = vmatprep.subr.bf16.mxu1 %v891_v53 }
  0x4c   :  { %894 = vmatpush3.bf16.msra.mxu1 %v891_v53 }
  0x4d   :  { %896 = vmatprep.subr.bf16.mxu1 %v895_v56 }
  0x50   :  { %898 = vmatpush3.bf16.msra.mxu1 %v895_v56 }
  0xf7   :  { %v621_v57 = vpop.f32.mrb[0].mxu0 }
  0xf8   :  { %v622_v59 = vpop.f32.mrb[1].mxu0 }
  0xf9   :  { %v659_v60 = vpop.f32.mrb[0].mxu1  ;;  %v623_v61 = vadd.f32 %v622_v59, %v621_v57 }
  0xfa   :  { %v660_v62 = vpop.f32.mrb[1].mxu1 }
  0xfb   :  { %v661_v63 = vadd.f32 %v660_v62, %v659_v60  ;;  %v214_v0 = vadd.f32 %v623_v61, %v585_v58  ;;  %v624_v1 = vpop.f32.mrb[2].mxu0 }
  0xfc   :  { %v625_v2 = vpop.f32.mrb[3].mxu0 }
  0xfd   :  { %v662_v3 = vpop.f32.mrb[2].mxu1  ;;  %v289_v4 = vadd.f32 %v661_v63, %v214_v0  ;;  %v626_v5 = vadd.f32 %v625_v2, %v624_v1 }
  0xfe   :  { %v663_v6 = vpop.f32.mrb[3].mxu1 }
  0xff   :  { %v664_v7 = vadd.f32 %v663_v6, %v662_v3  ;;  %v219_v8 = vadd.f32 %v626_v5, %v585_v58 }
 0x101   :  { %v731_v9 = vpop.f32.mrb[4].mxu1  ;;  %v294_v10 = vadd.f32 %v664_v7, %v219_v8 }
 0x102   :  { %v438_v11 = vpop.f32.mrb[5].mxu1 }
 0x117   :  { %v697_v12 = vpop.f32.mrb[4].mxu0 }
 0x118   :  { %v698_v13 = vpop.f32.mrb[5].mxu0 }
 0x119   :  { %v699_v14 = vadd.f32 %v698_v13, %v697_v12 }
 0x11b   :  { %v700_v15 = vpop.f32.mrb[6].mxu0  ;;  %v364_v16 = vadd.f32 %v699_v14, %v289_v4 }
 0x11c   :  { %v701_v17 = vpop.f32.mrb[7].mxu0 }
 0x11d   :  { %v702_v18 = vadd.f32 %v701_v17, %v700_v15  ;;  %v439_v19 = vadd.f32 %v438_v11, %v364_v16 }
 0x11f   :  { %v369_v20 = vadd.f32 %v702_v18, %v294_v10  ;;  %v447_v21 = vmax.f32 %v439_v19, 0.0 }
 0x121   :  { %v444_v22 = vadd.f32 %v731_v9, %v369_v20  ;;  %764 = vmatprep.mubr.f32.mxu1 %v447_v21 }
 0x123   :  { %v448_v23 = vmax.f32 %v444_v22, 0.0 }
 0x125   :  { %765 = vmatmul.mubr.f32.vlgmr.msra.gmra.mrb[6].mxu1 %v448_v23 }
 0x1f8   :  { %v766_v25 = vpop.f32.mrb[6].mxu1 }
 0x1f9   :  { %v538_v26 = vpop.f32.mrb[7].mxu1  ;;  %v544_v28 = vadd.f32 %v766_v25, %v588_v24 }
 0x1fa   :  { %v539_v27 = vadd.f32 %v588_v24, %v538_v26 }
 0x1fc   :  { %547 = vmax.xlane.f32.xlu0 %v539_v27 }
 0x200   :  { %549 = vmax.xlane.f32.xlu0 %v544_v28 }
 0x289   :  { %v548_v29 = vpop.xlane.xlu0 %547 }
 0x28a   :  { %v551_v30 = vsub.f32 %v539_v27, %v548_v29 }
 0x28c   :  { %v553_v31 = vmul.f32 1.442695, %v551_v30 }
 0x28d   :  { %v550_v32 = vpop.xlane.xlu0 %549 }
 0x28e   :  { %v552_v33 = vsub.f32 %v544_v28, %v550_v32  ;;  %902 = vpow2.f32 %v553_v31 }
 0x290   :  { %v555_v34 = vmul.f32 1.442695, %v552_v33 }
 0x292   :  { %904 = vpow2.f32 %v555_v34 }
 0x298   :  { %v903_v35 = vpop.eup %902 }
 0x299   :  { %557 = vadd.xlane.f32.xlu1 %v903_v35 }
 0x29c   :  { %v905_v36 = vpop.eup %904 }
 0x29d   :  { %559 = vadd.xlane.f32.xlu1 %v905_v36 }
 0x326   :  { %v558_v37 = vpop.xlane.xlu1 %557 }
 0x327   :  { %906 = vlog2.f32 %v558_v37 }
 0x32a   :  { %v560_v38 = vpop.xlane.xlu1 %559 }
 0x32b   :  { %908 = vlog2.f32 %v560_v38 }
 0x331   :  { %v907_v39 = vpop.eup %906 }
 0x332   :  { %v562_v40 = vmul.f32 0.6931472, %v907_v39 }
 0x334   :  { %v565_v41 = vsub.f32 %v551_v30, %v562_v40 }
 0x335   :  { %v909_v42 = vpop.eup %908 }
 0x336   :  { %567 = vst [vmem:[#allocation2] sm:$0xff] %v565_v41  ;;  %v564_v43 = vmul.f32 0.6931472, %v909_v42 }
 0x338   :  { %v566_v44 = vsub.f32 %v552_v33, %v564_v43 }
 0x33a   :  { %568 = vst [vmem:[#allocation2 + $0x8] sm:$0xff] %v566_v44 }
 0x33b   :  { %921 = shalt.err (!%p918_p4)
}
 0x33c   :  { %s922_s26 = scalar_lea.hbm %s1374_s5, 256 }
 0x33d   :  { %p923_p5 = scmp.ne.s32.totalorder %s1374_s5, %s922_s26  ;;  %p926_p6 = scmp.lt.u32.totalorder %s922_s26, %s1374_s5 }
 0x33f   :  { %p928_p7 = pnand %p926_p6, %p923_p5 }
 0x341   :  { %931 = shalt.err (!%p928_p7)
}
 0x342   :  { %s935_s6 = smov 128   ;;  %s936_s7 = smov 8  }
 0x343   :  { %580 = dma.vmem_to_hbm [thread:$0]  %s575_s23, 256, %s1374_s5, [#allocation3], %s935_s6, %s935_s6, %s936_s7  }
 0x344   :  { %932 = dma.done.wait [#allocation3], 256  }
 0x345   :  { %933 = vsyncadd [#allocation3], 4294967040 }
 0x346   :  { %584 = vsyncpa [#allocation3], 1 }

</bundles_post_ra>
